<compile_context>
chip_gen: v7x
topology: tpu7x:2x2x1
jax: 0.10.0
libtpu: 0.0.40
codegen_flags: <defaults>
</compile_context>

<pallas_src>
import functools

import jax
import jax.numpy as jnp
from jax.experimental import pallas as pl
from jax.experimental.pallas import tpu as pltpu


def _round_up(n: int, m: int) -> int:
    return (n + m - 1) // m * m


def generator_kernel(x_ref, w1_ref, b1_ref, w2_ref, b2_ref, o_ref):
    # Layer 1: x @ W1 + b1, ReLU.  x arrives as f32 straight from HBM; the
    # f32->bf16 cast rides idle VPU slots, the matmul runs on the MXU with
    # f32 accumulation, bias+ReLU stay on the VPU.
    x = x_ref[...].astype(jnp.bfloat16)
    h = jnp.dot(x, w1_ref[...], preferred_element_type=jnp.float32)
    h = jnp.maximum(h + b1_ref[...], 0.0)
    # Layer 2: h @ W2 + b2, tanh (tanh goes to the EUP slot).
    y = jnp.dot(h.astype(jnp.bfloat16), w2_ref[...],
                preferred_element_type=jnp.float32)
    o_ref[...] = jnp.tanh(y + b2_ref[...]).astype(o_ref.dtype)


def _pick_block_b(B: int, requested: int) -> int:
    """Batch tile: as large as requested, but keep >=2 grid steps when the
    batch allows it so both v7x TensorCores get work (harmless on v5e/v6e)."""
    bb = min(requested, _round_up(B, 8))
    if B > 16 and B <= bb:
        bb = _round_up((B + 1) // 2, 8)
    if bb >= B:
        bb = B  # full-array block dim is always legal; avoids OOB rows
    return bb


def prepare_params(w1, b1, w2, b2):
    """One-time parameter prep (do this OUTSIDE the per-step forward path):
    matmul weights -> bf16 for the MXU, biases stay f32 for the epilogue."""
    return (w1.astype(jnp.bfloat16), b1.astype(jnp.float32),
            w2.astype(jnp.bfloat16), b2.astype(jnp.float32))


@functools.partial(jax.jit, static_argnames=("block_b",))
def generator_forward(x, w1, b1, w2, b2, *, block_b=1024):
    """Forward pass: tanh(relu(x @ w1 + b1) @ w2 + b2).

    x:  [B, d_in]     float32 (cast to bf16 in-kernel)
    w1: [d_in, d_h]   bf16/f32   b1: [1, d_h]   f32
    w2: [d_h, d_out]  bf16/f32   b2: [1, d_out] f32
    """
    B, d_in = x.shape
    d_h = w1.shape[1]
    d_out = w2.shape[1]

    # No-ops if prepare_params was already applied.
    w1 = w1.astype(jnp.bfloat16)
    w2 = w2.astype(jnp.bfloat16)
    b1 = b1.reshape(1, d_h).astype(jnp.float32)
    b2 = b2.reshape(1, d_out).astype(jnp.float32)

    bb = _pick_block_b(B, block_b)
    grid = (pl.cdiv(B, bb),)

    cost = pl.CostEstimate(
        flops=2 * B * d_h * (d_in + d_out),
        transcendentals=B * d_out,
        bytes_accessed=(B * d_in * 4            # x (f32 in)
                        + B * d_out * 4         # out (f32)
                        + d_in * d_h * 2 + d_h * d_out * 2   # bf16 weights
                        + d_h * 4 + d_out * 4),              # f32 biases
    )

    return pl.pallas_call(
        generator_kernel,
        out_shape=jax.ShapeDtypeStruct((B, d_out), jnp.float32),
        grid_spec=pltpu.PrefetchScalarGridSpec(
            num_scalar_prefetch=0,
            grid=grid,
            in_specs=[
                pl.BlockSpec((bb, d_in), lambda i: (i, 0)),    # x stream
                pl.BlockSpec((d_in, d_h), lambda i: (0, 0)),   # W1 (resident)
                pl.BlockSpec((1, d_h), lambda i: (0, 0)),      # b1 (resident)
                pl.BlockSpec((d_h, d_out), lambda i: (0, 0)),  # W2 (resident)
                pl.BlockSpec((1, d_out), lambda i: (0, 0)),    # b2 (resident)
            ],
            out_specs=pl.BlockSpec((bb, d_out), lambda i: (i, 0)),
        ),
        compiler_params=pltpu.CompilerParams(
            dimension_semantics=("parallel",),   # batch tiles shard across TCs
        ),
        cost_estimate=cost,
    )(x, w1, b1, w2, b2)


def init_params(key, input_dim, hidden_dim, output_dim):
    """Deterministic init mimicking torch.nn.Linear's U(-1/sqrt(fan_in), 1/sqrt(fan_in))."""
    k1, k2, k3, k4 = jax.random.split(key, 4)
    bound1 = 1.0 / jnp.sqrt(jnp.float32(input_dim))
    bound2 = 1.0 / jnp.sqrt(jnp.float32(hidden_dim))
    w1 = jax.random.uniform(k1, (input_dim, hidden_dim), jnp.float32, -bound1, bound1)
    b1 = jax.random.uniform(k2, (1, hidden_dim), jnp.float32, -bound1, bound1)
    w2 = jax.random.uniform(k3, (hidden_dim, output_dim), jnp.float32, -bound2, bound2)
    b2 = jax.random.uniform(k4, (1, output_dim), jnp.float32, -bound2, bound2)
    return w1, b1, w2, b2


if __name__ == "__main__":
    input_dim = 100    # as in the PyTorch script
    hidden_dim = 128   # as in the PyTorch script
    output_dim = 64    # small synthetic output size
    batch = 512        # auto-split into 2 x 256-row tiles -> both v7x TCs busy

    key = jax.random.PRNGKey(0)
    k_params, k_x = jax.random.split(key)
    w1, b1, w2, b2 = init_params(k_params, input_dim, hidden_dim, output_dim)
    x = jax.random.normal(k_x, (batch, input_dim), jnp.float32)

    # Hoist the bf16 weight cast out of the per-call path (review item).
    w1b, b1f, w2b, b2f = prepare_params(w1, b1, w2, b2)

    out = generator_forward(x, w1b, b1f, w2b, b2f)
    out = jax.block_until_ready(out)

    # Pure-JAX reference with the same bf16-operand / f32-accumulate recipe.
    h_ref = jnp.maximum(
        jnp.dot(x.astype(jnp.bfloat16), w1b,
                preferred_element_type=jnp.float32) + b1, 0.0)
    ref = jnp.tanh(
        jnp.dot(h_ref.astype(jnp.bfloat16), w2b,
                preferred_element_type=jnp.float32) + b2)

    assert out.shape == (batch, output_dim)
    assert jnp.allclose(out, ref, atol=2e-3, rtol=2e-3), \
        float(jnp.max(jnp.abs(out - ref)))

    print("KERNEL_OK")
</pallas_src>

<mosaic_0001>
module attributes {stable_mosaic.version = 11 : i64} {
  func.func @generator_kernel(%arg0: i32, %arg1: memref<256x100xf32, #tpu.memory_space<vmem>>, %arg2: memref<100x128xbf16, #tpu.memory_space<vmem>>, %arg3: memref<1x128xf32, #tpu.memory_space<vmem>>, %arg4: memref<128x64xbf16, #tpu.memory_space<vmem>>, %arg5: memref<1x64xf32, #tpu.memory_space<vmem>>, %arg6: memref<256x64xf32, #tpu.memory_space<vmem>>) attributes {dimension_semantics = [#tpu.dimension_semantics<parallel>], iteration_bounds = array<i64: 2>, scalar_prefetch = 0 : i64, scratch_operands = 0 : i64, tpu.core_type = #tpu.core_type<tc>, window_params = [{transform_indices = @transform_0, window_bounds = array<i64: 256, 100>}, {pipeline_mode = #tpu.pipeline_mode<synchronous>, transform_indices = @transform_1, window_bounds = array<i64: 100, 128>}, {pipeline_mode = #tpu.pipeline_mode<synchronous>, transform_indices = @transform_2, window_bounds = array<i64: 1, 128>}, {pipeline_mode = #tpu.pipeline_mode<synchronous>, transform_indices = @transform_3, window_bounds = array<i64: 128, 64>}, {pipeline_mode = #tpu.pipeline_mode<synchronous>, transform_indices = @transform_4, window_bounds = array<i64: 1, 64>}, {transform_indices = @transform_5, window_bounds = array<i64: 256, 64>}]} {
    %c0 = arith.constant 0 : index
    %c0_0 = arith.constant 0 : index
    %0 = vector.load %arg1[%c0, %c0_0] : memref<256x100xf32, #tpu.memory_space<vmem>>, vector<256x100xf32>
    %1 = arith.truncf %0 : vector<256x100xf32> to vector<256x100xbf16>
    %c0_1 = arith.constant 0 : index
    %c0_2 = arith.constant 0 : index
    %2 = vector.load %arg2[%c0_1, %c0_2] : memref<100x128xbf16, #tpu.memory_space<vmem>>, vector<100x128xbf16>
    %cst = arith.constant dense<0.000000e+00> : vector<256x128xf32>
    %3 = tpu.matmul %1, %2, %cst {dimension_numbers = #tpu.dot_dimension_numbers<[1], [0], [0], [1], [0, 0, 1, 1], [], []>} : vector<256x100xbf16>, vector<100x128xbf16>, vector<256x128xf32> -> vector<256x128xf32>
    %c0_3 = arith.constant 0 : index
    %c0_4 = arith.constant 0 : index
    %4 = vector.load %arg3[%c0_3, %c0_4] : memref<1x128xf32, #tpu.memory_space<vmem>>, vector<1x128xf32>
    %5 = vector.broadcast %4 : vector<1x128xf32> to vector<256x128xf32>
    %6 = arith.addf %3, %5 : vector<256x128xf32>
    %cst_5 = arith.constant 0.000000e+00 : f32
    %7 = vector.broadcast %cst_5 : f32 to vector<256x128xf32>
    %8 = arith.maximumf %6, %7 : vector<256x128xf32>
    %9 = arith.truncf %8 : vector<256x128xf32> to vector<256x128xbf16>
    %c0_6 = arith.constant 0 : index
    %c0_7 = arith.constant 0 : index
    %10 = vector.load %arg4[%c0_6, %c0_7] : memref<128x64xbf16, #tpu.memory_space<vmem>>, vector<128x64xbf16>
    %cst_8 = arith.constant dense<0.000000e+00> : vector<256x64xf32>
    %11 = tpu.matmul %9, %10, %cst_8 {dimension_numbers = #tpu.dot_dimension_numbers<[1], [0], [0], [1], [0, 0, 1, 1], [], []>} : vector<256x128xbf16>, vector<128x64xbf16>, vector<256x64xf32> -> vector<256x64xf32>
    %c0_9 = arith.constant 0 : index
    %c0_10 = arith.constant 0 : index
    %12 = vector.load %arg5[%c0_9, %c0_10] : memref<1x64xf32, #tpu.memory_space<vmem>>, vector<1x64xf32>
    %13 = vector.broadcast %12 : vector<1x64xf32> to vector<256x64xf32>
    %14 = arith.addf %11, %13 : vector<256x64xf32>
    %15 = math.tanh %14 : vector<256x64xf32>
    %c0_11 = arith.constant 0 : index
    %c0_12 = arith.constant 0 : index
    %16 = vector.load %arg6[%c0_11, %c0_12] : memref<256x64xf32, #tpu.memory_space<vmem>>, vector<256x64xf32>
    tpu.vector_store %arg6[%c0_11, %c0_12], %15 {strides = array<i32>} : memref<256x64xf32, #tpu.memory_space<vmem>>, vector<256x64xf32>,
    return
  }
  func.func @transform_0(%arg0: i32) -> (i32, i32) {
    %c0_i32 = arith.constant 0 : i32
    %c0_i32_0 = arith.constant 0 : i32
    return %arg0, %c0_i32 : i32, i32
  }
  func.func @transform_1(%arg0: i32) -> (i32, i32) {
    %c0_i32 = arith.constant 0 : i32
    %c0_i32_0 = arith.constant 0 : i32
    %c0_i32_1 = arith.constant 0 : i32
    return %c0_i32, %c0_i32_0 : i32, i32
  }
  func.func @transform_2(%arg0: i32) -> (i32, i32) {
    %c0_i32 = arith.constant 0 : i32
    %c0_i32_0 = arith.constant 0 : i32
    %c0_i32_1 = arith.constant 0 : i32
    return %c0_i32, %c0_i32_0 : i32, i32
  }
  func.func @transform_3(%arg0: i32) -> (i32, i32) {
    %c0_i32 = arith.constant 0 : i32
    %c0_i32_0 = arith.constant 0 : i32
    %c0_i32_1 = arith.constant 0 : i32
    return %c0_i32, %c0_i32_0 : i32, i32
  }
  func.func @transform_4(%arg0: i32) -> (i32, i32) {
    %c0_i32 = arith.constant 0 : i32
    %c0_i32_0 = arith.constant 0 : i32
    %c0_i32_1 = arith.constant 0 : i32
    return %c0_i32, %c0_i32_0 : i32, i32
  }
  func.func @transform_5(%arg0: i32) -> (i32, i32) {
    %c0_i32 = arith.constant 0 : i32
    %c0_i32_0 = arith.constant 0 : i32
    return %arg0, %c0_i32 : i32, i32
  }
}

</mosaic_0001>

<bundles_post_ra>
// kernel: generator_forward.1
= control target key start
LH: loop header
LB: loop body
LE: loop exit
PB: predicated region body
PF: predicated region fallthrough
CT: control target
= control target key end

     0   :  { %s1262_s18 = smov 0   ;;  %s1521_s0 = inlined_call_operand.vmem [shape: f32[512,100], index: 0, kind: input, shape index: {}]   ;;  %s1522_s1 = inlined_call_operand.vmem [shape: bf16[100,128], index: 1, kind: input, shape index: {}]   ;;  %s1523_s2 = inlined_call_operand.vmem [shape: f32[1,128], index: 2, kind: input, shape index: {}]   ;;  %s1524_s3 = inlined_call_operand.vmem [shape: bf16[128,64], index: 3, kind: input, shape index: {}]   ;;  %s1525_s4 = inlined_call_operand.vmem [shape: f32[1,64], index: 4, kind: input, shape index: {}]   ;;  %s1526_s5 = inlined_call_operand.vmem [shape: f32[512,64], index: 5, kind: output, shape index: {}]  }
   0x1 LB: > { %s951_s19 = sadd.s32 4294967295, %s1230_s18   ;;  %p955_p0 = scmp.ge.s32.totalorder %s1230_s18, 1  ;;  %s1230_s18 = sphi %s1262_s18, %s15_s18  }
   0x2   : > { %p188_p1 = scmp.lt.s32.totalorder %s1230_s18, 3 }
   0x4   : > { %p189_p2 = pnand %p955_p0, %p188_p1 }
   0x5   : > { %v1145_v0 = vld [vmem:[%s1522_s1] sm:$0xff] (!%p189_p2)   ;;  %v1146_v1 = vld [vmem:[%s1522_s1 + $0x8] sm:$0xff] (!%p189_p2)   ;;  %s956_s24 = sshll.u32 (!%p189_p2), %s951_s19, 5  ;;  %v1147_v2 = vld [vmem:[%s1522_s1 + $0x10] sm:$0xff] (!%p189_p2)   ;;  %vm336_vm0 = vcmask (!%p189_p2), 818176   ;;  %vm385_vm1 = vcmask (!%p189_p2), 1041408  }
   0x6   : > { %192 = sbr.rel (%p189_p2) target bundleno = 541 (0x21d), region = 40  ;;  %1042 = vmatprep.subr.bf16.mxu0 (!%p189_p2), %v1145_v0  ;;  %p217_p3 = scmp.lt.s32.totalorder (!%p189_p2), %s956_s24, 63  ;;  %v1152_v3 = vld [vmem:[%s1524_s3] sm:$0xff] (!%p189_p2)   ;;  %v1148_v4 = vld [vmem:[%s1522_s1 + $0x18] sm:$0xff] (!%p189_p2)   ;;  %v1150_v9 = vld [vmem:[%s1522_s1 + $0x28] sm:$0xff] (!%p189_p2)   ;;  %vm862_vm2 = vcmask (!%p189_p2), 523264  }
   0x7   : > { %1043 = vmatpush3.bf16.msra.mxu0 (!%p189_p2), %v1145_v0  ;;  %1088 = vmatprep.subr.bf16.mxu1 (!%p189_p2), %v1152_v3  ;;  %v1149_v8 = vld [vmem:[%s1522_s1 + $0x20] sm:$0xff] (!%p189_p2)   ;;  %v1151_v10 = vld [vmem:[%s1522_s1 + $0x30] ss:$0 sps:$4 sm:$0x33] (!%p189_p2)   ;;  %v1153_v11 = vld [vmem:[%s1524_s3 + $0x8] sm:$0xff] (!%p189_p2)  }
   0x8   : > { %1044 = vmatprep.subr.bf16.mxu0 (!%p189_p2), %v1146_v1  ;;  %1089 = vmatpush3.bf16.msra.mxu1 (!%p189_p2), %v1152_v3  ;;  %v1154_v12 = vld [vmem:[%s1524_s3 + $0x10] sm:$0xff] (!%p189_p2)   ;;  %v387_v17 = vsel (!%p189_p2), %vm385_vm1, %v1151_v10, 0  ;;  %v1155_v18 = vld [vmem:[%s1524_s3 + $0x18] sm:$0xff] (!%p189_p2)   ;;  %v1156_v21 = vld [vmem:[%s1524_s3 + $0x20] sm:$0xff] (!%p189_p2)  }
   0x9   : > { %1090 = vmatprep.subr.bf16.mxu1 (!%p189_p2), %v1153_v11  ;;  %v1157_v24 = vld [vmem:[%s1524_s3 + $0x28] sm:$0xff] (!%p189_p2)   ;;  %v1158_v62 = vld [vmem:[%s1524_s3 + $0x30] sm:$0xff] (!%p189_p2)   ;;  %v1159_v63 = vld [vmem:[%s1524_s3 + $0x38] sm:$0xff] (!%p189_p2)  }
   0xa   : > { %v1376_v0 = vld [vmem:[%s1523_s2] ss:$0 sm:$0xff] (!%p189_p2) }
   0xb   : > { %1045 = vmatpush3.bf16.msra.mxu0 (!%p189_p2), %v1146_v1 }
   0xc   : > { %1046 = vmatprep.subr.bf16.mxu0 (!%p189_p2), %v1147_v2  ;;  %1091 = vmatpush3.bf16.msra.mxu1 (!%p189_p2), %v1153_v11 }
   0xd   : > { %s1528_s24 = smov (!%p217_p3, %s956_s24), 63  ;;  %1092 = vmatprep.subr.bf16.mxu1 %v1154_v12 }
   0xe   : > { %s957_s27 = sshll.u32 %s1528_s24, 3 }
   0xf   : > { %s1287_s30 = scalar_lea.vmem %s1521_s0, %s957_s27  ;;  %1047 = vmatpush3.bf16.msra.mxu0 %v1147_v2  ;;  %s1426_s14 = scalar_lea.vmem %s1526_s5, %s957_s27 }
  0x10   : > { %v229_v5 = vld [vmem:[%s1287_s30] sm:$0xff]  ;;  %v230_v6 = vld [vmem:[%s1287_s30 + $0x8] sm:$0xff]  ;;  %1048 = vmatprep.subr.bf16.mxu0 %v1148_v4  ;;  %v231_v13 = vld [vmem:[%s1287_s30 + $0x10] sm:$0xff]  ;;  %1093 = vmatpush3.bf16.msra.mxu1 %v1154_v12 }
  0x11   : > { %v261_v7 = vpack.c.bf16 %v230_v6, %v229_v5  ;;  %v232_v14 = vld [vmem:[%s1287_s30 + $0x18] sm:$0xff]  ;;  %v233_v15 = vld [vmem:[%s1287_s30 + $0x20] sm:$0xff]  ;;  %v234_v16 = vld [vmem:[%s1287_s30 + $0x28] sm:$0xff]  ;;  %1094 = vmatprep.subr.bf16.mxu1 %v1155_v18 }
  0x12   : > { %v262_v19 = vpack.c.bf16 %v232_v14, %v231_v13  ;;  %v263_v20 = vpack.c.bf16 %v234_v16, %v233_v15  ;;  %v235_v22 = vld [vmem:[%s1287_s30 + $0x30] sm:$0xff]  ;;  %v236_v23 = vld [vmem:[%s1287_s30 + $0x38] sm:$0xff]  ;;  %v237_v25 = vld [vmem:[%s1287_s30 + $0x40] sm:$0xff] }
  0x13   : > { %1056 = vmatprep.mubr.msk.bf16.mxu0 %vm336_vm0, %v261_v7  ;;  %1049 = vmatpush3.bf16.msra.mxu0 %v1148_v4  ;;  %v238_v26 = vld [vmem:[%s1287_s30 + $0x48] sm:$0xff]  ;;  %v264_v27 = vpack.c.bf16 %v236_v23, %v235_v22  ;;  %v239_v29 = vld [vmem:[%s1287_s30 + $0x50] sm:$0xff]  ;;  %v240_v30 = vld [vmem:[%s1287_s30 + $0x58] sm:$0xff] }
  0x14   : > { %1050 = vmatprep.subr.bf16.mxu0 %v1149_v8  ;;  %1095 = vmatpush3.bf16.msra.mxu1 %v1155_v18  ;;  %v265_v28 = vpack.c.bf16 %v238_v26, %v237_v25  ;;  %v241_v31 = vld [vmem:[%s1287_s30 + $0x60] sm:$0xff]  ;;  %v242_v32 = vld [vmem:[%s1287_s30 + $0x68] sm:$0xff]  ;;  %v266_v33 = vpack.c.bf16 %v240_v30, %v239_v29  ;;  %v243_v35 = vld [vmem:[%s1287_s30 + $0x70] sm:$0xff] }
  0x15   : > { %1096 = vmatprep.subr.bf16.mxu1 %v1156_v21  ;;  %v267_v34 = vpack.c.bf16 %v242_v32, %v241_v31  ;;  %v244_v36 = vld [vmem:[%s1287_s30 + $0x78] sm:$0xff]  ;;  %v245_v37 = vld [vmem:[%s1287_s30 + $0x80] sm:$0xff]  ;;  %v246_v38 = vld [vmem:[%s1287_s30 + $0x88] sm:$0xff] }
  0x16   : > { %v268_v39 = vpack.c.bf16 %v244_v36, %v243_v35  ;;  %v269_v40 = vpack.c.bf16 %v246_v38, %v245_v37  ;;  %v247_v41 = vld [vmem:[%s1287_s30 + $0x90] sm:$0xff]  ;;  %v248_v42 = vld [vmem:[%s1287_s30 + $0x98] sm:$0xff]  ;;  %v249_v43 = vld [vmem:[%s1287_s30 + $0xa0] sm:$0xff] }
  0x17   : > { %1051 = vmatpush3.bf16.msra.mxu0 %v1149_v8  ;;  %v250_v44 = vld [vmem:[%s1287_s30 + $0xa8] sm:$0xff]  ;;  %v270_v45 = vpack.c.bf16 %v248_v42, %v247_v41  ;;  %v251_v47 = vld [vmem:[%s1287_s30 + $0xb0] sm:$0xff]  ;;  %v252_v48 = vld [vmem:[%s1287_s30 + $0xb8] sm:$0xff] }
  0x18   : > { %1052 = vmatprep.subr.bf16.mxu0 %v1150_v9  ;;  %1097 = vmatpush3.bf16.msra.mxu1 %v1156_v21  ;;  %v271_v46 = vpack.c.bf16 %v250_v44, %v249_v43  ;;  %v253_v49 = vld [vmem:[%s1287_s30 + $0xc0] sm:$0xff]  ;;  %v254_v50 = vld [vmem:[%s1287_s30 + $0xc8] sm:$0xff]  ;;  %v272_v51 = vpack.c.bf16 %v252_v48, %v251_v47  ;;  %v255_v53 = vld [vmem:[%s1287_s30 + $0xd0] sm:$0xff] }
  0x19   : > { %1098 = vmatprep.subr.bf16.mxu1 %v1157_v24  ;;  %v273_v52 = vpack.c.bf16 %v254_v50, %v253_v49  ;;  %v256_v54 = vld [vmem:[%s1287_s30 + $0xd8] sm:$0xff]  ;;  %v257_v55 = vld [vmem:[%s1287_s30 + $0xe0] sm:$0xff]  ;;  %v258_v56 = vld [vmem:[%s1287_s30 + $0xe8] sm:$0xff] }
  0x1a   : > { %v274_v57 = vpack.c.bf16 %v256_v54, %v255_v53  ;;  %v275_v58 = vpack.c.bf16 %v258_v56, %v257_v55  ;;  %v259_v59 = vld [vmem:[%s1287_s30 + $0xf0] sm:$0xff]  ;;  %v260_v60 = vld [vmem:[%s1287_s30 + $0xf8] sm:$0xff] }
  0x1b   : > { %1053 = vmatpush3.bf16.msra.mxu0 %v1150_v9  ;;  %v276_v61 = vpack.c.bf16 %v260_v60, %v259_v59 }
  0x1c   : > { %1136 = vmatprep.subr.msk.bf16.mxu0 %vm385_vm1, %v1151_v10  ;;  %1099 = vmatpush3.bf16.msra.mxu1 %v1157_v24 }
  0x1d   : > { %1100 = vmatprep.subr.bf16.mxu1 %v1158_v62 }
  0x1f   : > { %1055 = vmatpush3.bf16.msra.mxu0 %v387_v17 }
  0x20   : > { %1101 = vmatpush3.bf16.msra.mxu1 %v1158_v62 }
  0x21   : > { %1102 = vmatprep.subr.bf16.mxu1 %v1159_v63 }
  0x22   : > { %1057 = vmatmul.mubr.msk.bf16.vlgmr.msra.gmra.mrb[0].mxu0 %vm336_vm0, %v262_v19 }
  0x23   : > { %1060 = vmatprep.mubr.msk.bf16.mxu0 %vm336_vm0, %v263_v20 }
  0x24   : > { %1103 = vmatpush3.bf16.msra.mxu1 %v1159_v63 }
  0x2a   : > { %1061 = vmatmul.mubr.msk.bf16.gmra.mrb[4].mxu0 %vm336_vm0, %v264_v27 }
  0x2b   : > { %1064 = vmatprep.mubr.msk.bf16.mxu0 %vm336_vm0, %v265_v28 }
  0x32   : > { %1065 = vmatmul.mubr.msk.bf16.gmra.mrb[8].mxu0 %vm336_vm0, %v266_v33 }
  0x33   : > { %1068 = vmatprep.mubr.msk.bf16.mxu0 %vm336_vm0, %v267_v34 }
  0x3a   : > { %1069 = vmatmul.mubr.msk.bf16.gmra.mrb[12].mxu0 %vm336_vm0, %v268_v39 }
  0x3b   : > { %1072 = vmatprep.mubr.msk.bf16.mxu0 %vm336_vm0, %v269_v40 }
  0x42   : > { %1073 = vmatmul.mubr.msk.bf16.gmra.mrb[16].mxu0 %vm336_vm0, %v270_v45 }
  0x43   : > { %1076 = vmatprep.mubr.msk.bf16.mxu0 %vm336_vm0, %v271_v46 }
  0x4a   : > { %1077 = vmatmul.mubr.msk.bf16.gmra.mrb[20].mxu0 %vm336_vm0, %v272_v51 }
  0x4b   : > { %1080 = vmatprep.mubr.msk.bf16.mxu0 %vm336_vm0, %v273_v52 }
  0x52   : > { %1081 = vmatmul.mubr.msk.bf16.gmra.mrb[24].mxu0 %vm336_vm0, %v274_v57 }
  0x53   : > { %1084 = vmatprep.mubr.msk.bf16.mxu0 %vm336_vm0, %v275_v58 }
  0x5a   : > { %1085 = vmatmul.mubr.msk.bf16.gmra.mrb[28].mxu0 %vm336_vm0, %v276_v61 }
  0xf5   : > { %v1058_v1 = vpop.f32.mrb[0].mxu0 }
  0xf6   : > { %v432_v2 = vadd.f32 %v1058_v1, %v1376_v0  ;;  %v423_v3 = vpop.f32.mrb[1].mxu0 }
  0xf7   : > { %v424_v4 = vadd.f32 %v1376_v0, %v423_v3  ;;  %v1059_v5 = vpop.f32.mrb[2].mxu0 }
  0xf8   : > { %v435_v6 = vadd.f32 %v1059_v5, %v1376_v0  ;;  %v426_v7 = vpop.f32.mrb[3].mxu0  ;;  %v552_v9 = vmax.f32 %v432_v2, 0.0 }
  0xf9   : > { %v427_v8 = vadd.f32 %v1376_v0, %v426_v7  ;;  %v550_v11 = vmax.f32 %v424_v4, 0.0 }
  0xfa   : > { %v553_v10 = vmax.f32 %v435_v6, 0.0 }
  0xfb   : > { %v551_v12 = vmax.f32 %v427_v8, 0.0 }
  0xfc   : > { %v583_v13 = vpack.c.bf16 %v553_v10, %v552_v9 }
  0xfd   : > { %v1062_v14 = vpop.f32.mrb[4].mxu0  ;;  %v582_v15 = vpack.c.bf16 %v551_v12, %v550_v11 }
  0xfe   : > { %v448_v16 = vadd.f32 %v1062_v14, %v1376_v0  ;;  %v439_v17 = vpop.f32.mrb[5].mxu0 }
  0xff   : > { %v440_v18 = vadd.f32 %v1376_v0, %v439_v17  ;;  %v1063_v19 = vpop.f32.mrb[6].mxu0  ;;  %1104 = vmatprep.mubr.bf16.mxu1 %v582_v15 }
 0x100   : > { %v451_v20 = vadd.f32 %v1063_v19, %v1376_v0  ;;  %v442_v21 = vpop.f32.mrb[7].mxu0  ;;  %1105 = vmatmul.mubr.bf16.vlgmr.msra.gmra.mrb[0].mxu1 %v583_v13  ;;  %v556_v23 = vmax.f32 %v448_v16, 0.0 }
 0x101   : > { %v443_v22 = vadd.f32 %v1376_v0, %v442_v21  ;;  %v554_v25 = vmax.f32 %v440_v18, 0.0 }
 0x102   : > { %v557_v24 = vmax.f32 %v451_v20, 0.0 }
 0x103   : > { %v555_v26 = vmax.f32 %v443_v22, 0.0 }
 0x104   : > { %v585_v27 = vpack.c.bf16 %v557_v24, %v556_v23 }
 0x105   : > { %v584_v28 = vpack.c.bf16 %v555_v26, %v554_v25  ;;  %v1066_v29 = vpop.f32.mrb[8].mxu0 }
 0x106   : > { %v464_v30 = vadd.f32 %v1066_v29, %v1376_v0  ;;  %v455_v31 = vpop.f32.mrb[9].mxu0 }
 0x107   : > { %v456_v32 = vadd.f32 %v1376_v0, %v455_v31  ;;  %v1067_v33 = vpop.f32.mrb[10].mxu0  ;;  %1108 = vmatprep.mubr.bf16.mxu1 %v584_v28 }
 0x108   : > { %v467_v34 = vadd.f32 %v1067_v33, %v1376_v0  ;;  %v458_v35 = vpop.f32.mrb[11].mxu0  ;;  %1109 = vmatmul.mubr.bf16.gmra.mrb[4].mxu1 %v585_v27  ;;  %v560_v37 = vmax.f32 %v464_v30, 0.0 }
 0x109   : > { %v459_v36 = vadd.f32 %v1376_v0, %v458_v35  ;;  %v558_v39 = vmax.f32 %v456_v32, 0.0 }
 0x10a   : > { %v561_v38 = vmax.f32 %v467_v34, 0.0 }
 0x10b   : > { %v559_v40 = vmax.f32 %v459_v36, 0.0 }
 0x10c   : > { %v587_v41 = vpack.c.bf16 %v561_v38, %v560_v37 }
 0x10d   : > { %v586_v42 = vpack.c.bf16 %v559_v40, %v558_v39  ;;  %v1070_v43 = vpop.f32.mrb[12].mxu0 }
 0x10e   : > { %v480_v44 = vadd.f32 %v1070_v43, %v1376_v0  ;;  %v471_v45 = vpop.f32.mrb[13].mxu0 }
 0x10f   : > { %v472_v46 = vadd.f32 %v1376_v0, %v471_v45  ;;  %v1071_v47 = vpop.f32.mrb[14].mxu0  ;;  %1112 = vmatprep.mubr.bf16.mxu1 %v586_v42 }
 0x110   : > { %v483_v48 = vadd.f32 %v1071_v47, %v1376_v0  ;;  %v474_v49 = vpop.f32.mrb[15].mxu0  ;;  %1113 = vmatmul.mubr.bf16.gmra.mrb[8].mxu1 %v587_v41  ;;  %v564_v51 = vmax.f32 %v480_v44, 0.0 }
 0x111   : > { %v475_v50 = vadd.f32 %v1376_v0, %v474_v49  ;;  %v562_v53 = vmax.f32 %v472_v46, 0.0 }
 0x112   : > { %v565_v52 = vmax.f32 %v483_v48, 0.0 }
 0x113   : > { %v563_v54 = vmax.f32 %v475_v50, 0.0  ;;  %v1413_v50 = vld [vmem:[%s1525_s4] ss:$0 sm:$0xff] }
 0x114   : > { %v589_v55 = vpack.c.bf16 %v565_v52, %v564_v51 }
 0x115   : > { %v588_v56 = vpack.c.bf16 %v563_v54, %v562_v53  ;;  %v1074_v57 = vpop.f32.mrb[16].mxu0 }
 0x116   : > { %v496_v58 = vadd.f32 %v1074_v57, %v1376_v0  ;;  %v487_v59 = vpop.f32.mrb[17].mxu0 }
 0x117   : > { %v488_v60 = vadd.f32 %v1376_v0, %v487_v59  ;;  %v1075_v61 = vpop.f32.mrb[18].mxu0  ;;  %1116 = vmatprep.mubr.bf16.mxu1 %v588_v56 }
 0x118   : > { %v499_v62 = vadd.f32 %v1075_v61, %v1376_v0  ;;  %v490_v63 = vpop.f32.mrb[19].mxu0  ;;  %1117 = vmatmul.mubr.bf16.gmra.mrb[12].mxu1 %v589_v55  ;;  %v568_v2 = vmax.f32 %v496_v58, 0.0 }
 0x119   : > { %v491_v1 = vadd.f32 %v1376_v0, %v490_v63  ;;  %v566_v4 = vmax.f32 %v488_v60, 0.0 }
 0x11a   : > { %v569_v3 = vmax.f32 %v499_v62, 0.0 }
 0x11b   : > { %v567_v5 = vmax.f32 %v491_v1, 0.0 }
 0x11c   : > { %v591_v6 = vpack.c.bf16 %v569_v3, %v568_v2 }
 0x11d   : > { %v590_v7 = vpack.c.bf16 %v567_v5, %v566_v4  ;;  %v1078_v8 = vpop.f32.mrb[20].mxu0 }
 0x11e   : > { %v512_v9 = vadd.f32 %v1078_v8, %v1376_v0  ;;  %v503_v10 = vpop.f32.mrb[21].mxu0 }
 0x11f   : > { %v504_v11 = vadd.f32 %v1376_v0, %v503_v10  ;;  %v1079_v12 = vpop.f32.mrb[22].mxu0  ;;  %1120 = vmatprep.mubr.bf16.mxu1 %v590_v7 }
 0x120   : > { %v515_v13 = vadd.f32 %v1079_v12, %v1376_v0  ;;  %v506_v14 = vpop.f32.mrb[23].mxu0  ;;  %1121 = vmatmul.mubr.bf16.gmra.mrb[16].mxu1 %v591_v6  ;;  %v572_v16 = vmax.f32 %v512_v9, 0.0 }
 0x121   : > { %v507_v15 = vadd.f32 %v1376_v0, %v506_v14  ;;  %v570_v18 = vmax.f32 %v504_v11, 0.0 }
 0x122   : > { %v573_v17 = vmax.f32 %v515_v13, 0.0 }
 0x123   : > { %v571_v19 = vmax.f32 %v507_v15, 0.0 }
 0x124   : > { %v593_v20 = vpack.c.bf16 %v573_v17, %v572_v16 }
 0x125   : > { %v592_v21 = vpack.c.bf16 %v571_v19, %v570_v18  ;;  %v1082_v22 = vpop.f32.mrb[24].mxu0 }
 0x126   : > { %v528_v23 = vadd.f32 %v1082_v22, %v1376_v0  ;;  %v519_v24 = vpop.f32.mrb[25].mxu0 }
 0x127   : > { %v520_v25 = vadd.f32 %v1376_v0, %v519_v24  ;;  %v1083_v26 = vpop.f32.mrb[26].mxu0  ;;  %1124 = vmatprep.mubr.bf16.mxu1 %v592_v21 }
 0x128   : > { %v531_v27 = vadd.f32 %v1083_v26, %v1376_v0  ;;  %v522_v28 = vpop.f32.mrb[27].mxu0  ;;  %1125 = vmatmul.mubr.bf16.gmra.mrb[20].mxu1 %v593_v20  ;;  %v576_v30 = vmax.f32 %v528_v23, 0.0 }
 0x129   : > { %v523_v29 = vadd.f32 %v1376_v0, %v522_v28  ;;  %v574_v32 = vmax.f32 %v520_v25, 0.0 }
 0x12a   : > { %v577_v31 = vmax.f32 %v531_v27, 0.0 }
 0x12b   : > { %v575_v33 = vmax.f32 %v523_v29, 0.0 }
 0x12c   : > { %v595_v34 = vpack.c.bf16 %v577_v31, %v576_v30 }
 0x12d   : > { %v594_v35 = vpack.c.bf16 %v575_v33, %v574_v32  ;;  %v1086_v36 = vpop.f32.mrb[28].mxu0 }
 0x12e   : > { %v544_v37 = vadd.f32 %v1086_v36, %v1376_v0  ;;  %v535_v38 = vpop.f32.mrb[29].mxu0 }
 0x12f   : > { %v536_v39 = vadd.f32 %v1376_v0, %v535_v38  ;;  %v1087_v40 = vpop.f32.mrb[30].mxu0  ;;  %1128 = vmatprep.mubr.bf16.mxu1 %v594_v35 }
 0x130   : > { %v547_v41 = vadd.f32 %v1087_v40, %v1376_v0  ;;  %v538_v42 = vpop.f32.mrb[31].mxu0  ;;  %1129 = vmatmul.mubr.bf16.gmra.mrb[24].mxu1 %v595_v34  ;;  %v580_v44 = vmax.f32 %v544_v37, 0.0 }
 0x131   : > { %v539_v43 = vadd.f32 %v1376_v0, %v538_v42  ;;  %v578_v46 = vmax.f32 %v536_v39, 0.0 }
 0x132   : > { %v581_v45 = vmax.f32 %v547_v41, 0.0 }
 0x133   : > { %v579_v47 = vmax.f32 %v539_v43, 0.0 }
 0x134   : > { %v597_v48 = vpack.c.bf16 %v581_v45, %v580_v44 }
 0x135   : > { %v596_v49 = vpack.c.bf16 %v579_v47, %v578_v46 }
 0x137   : > { %1132 = vmatprep.mubr.bf16.mxu1 %v596_v49 }
 0x138   : > { %1133 = vmatmul.mubr.bf16.gmra.mrb[28].mxu1 %v597_v48 }
 0x1d3   : > { %v1106_v51 = vpop.f32.mrb[0].mxu1 }
 0x1d4   : > { %v712_v52 = vadd.f32 %v1106_v51, %v1413_v50  ;;  %v703_v53 = vpop.f32.mrb[1].mxu1 }
 0x1d5   : > { %v704_v0 = vadd.f32 %v1413_v50, %v703_v53  ;;  %v1107_v54 = vpop.f32.mrb[2].mxu1 }
 0x1d6   : > { %1160 = vtanh.f32 %v712_v52  ;;  %v715_v55 = vadd.f32 %v1107_v54, %v1413_v50  ;;  %v706_v56 = vpop.f32.mrb[3].mxu1 }
 0x1d7   : > { %1162 = vtanh.f32 %v704_v0  ;;  %v707_v57 = vadd.f32 %v1413_v50, %v706_v56 }
 0x1d8   : > { %1164 = vtanh.f32 %v715_v55 }
 0x1d9   : > { %1166 = vtanh.f32 %v707_v57 }
 0x1db   : > { %v1110_v58 = vpop.f32.mrb[4].mxu1 }
 0x1dc   : > { %v728_v59 = vadd.f32 %v1110_v58, %v1413_v50  ;;  %v719_v60 = vpop.f32.mrb[5].mxu1 }
 0x1dd   : > { %v720_v61 = vadd.f32 %v1413_v50, %v719_v60  ;;  %v1111_v62 = vpop.f32.mrb[6].mxu1 }
 0x1de   : > { %1168 = vtanh.f32 %v728_v59  ;;  %v731_v63 = vadd.f32 %v1111_v62, %v1413_v50  ;;  %v722_v1 = vpop.f32.mrb[7].mxu1 }
 0x1df   : > { %1170 = vtanh.f32 %v720_v61  ;;  %v723_v2 = vadd.f32 %v1413_v50, %v722_v1 }
 0x1e0   : > { %v1161_v3 = vpop.eup %1160  ;;  %1172 = vtanh.f32 %v731_v63 }
 0x1e1   : > { %v1163_v4 = vpop.eup %1162  ;;  %865 = vst.msk [vmem:[%s1426_s14 + $0x10] sm:$0xff] %vm862_vm2, %v1161_v3  ;;  %1174 = vtanh.f32 %v723_v2 }
 0x1e2   : > { %v1165_v5 = vpop.eup %1164  ;;  %863 = vst.msk [vmem:[%s1426_s14] sm:$0xff] %vm862_vm2, %v1163_v4 }
 0x1e3   : > { %v1167_v6 = vpop.eup %1166  ;;  %866 = vst.msk [vmem:[%s1426_s14 + $0x18] sm:$0xff] %vm862_vm2, %v1165_v5  ;;  %v1114_v7 = vpop.f32.mrb[8].mxu1 }
 0x1e4   : > { %864 = vst.msk [vmem:[%s1426_s14 + $0x8] sm:$0xff] %vm862_vm2, %v1167_v6  ;;  %v744_v8 = vadd.f32 %v1114_v7, %v1413_v50  ;;  %v735_v9 = vpop.f32.mrb[9].mxu1 }
 0x1e5   : > { %v736_v10 = vadd.f32 %v1413_v50, %v735_v9  ;;  %v1115_v11 = vpop.f32.mrb[10].mxu1 }
 0x1e6   : > { %1176 = vtanh.f32 %v744_v8  ;;  %v747_v12 = vadd.f32 %v1115_v11, %v1413_v50  ;;  %v738_v13 = vpop.f32.mrb[11].mxu1 }
 0x1e7   : > { %1178 = vtanh.f32 %v736_v10  ;;  %v739_v14 = vadd.f32 %v1413_v50, %v738_v13 }
 0x1e8   : > { %v1169_v15 = vpop.eup %1168  ;;  %1180 = vtanh.f32 %v747_v12 }
 0x1e9   : > { %v1171_v16 = vpop.eup %1170  ;;  %869 = vst.msk [vmem:[%s1426_s14 + $0x30] sm:$0xff] %vm862_vm2, %v1169_v15  ;;  %1182 = vtanh.f32 %v739_v14 }
 0x1ea   : > { %v1173_v17 = vpop.eup %1172  ;;  %867 = vst.msk [vmem:[%s1426_s14 + $0x20] sm:$0xff] %vm862_vm2, %v1171_v16 }
 0x1eb   : > { %v1175_v18 = vpop.eup %1174  ;;  %870 = vst.msk [vmem:[%s1426_s14 + $0x38] sm:$0xff] %vm862_vm2, %v1173_v17  ;;  %v1118_v19 = vpop.f32.mrb[12].mxu1 }
 0x1ec   : > { %868 = vst.msk [vmem:[%s1426_s14 + $0x28] sm:$0xff] %vm862_vm2, %v1175_v18  ;;  %v760_v20 = vadd.f32 %v1118_v19, %v1413_v50  ;;  %v751_v21 = vpop.f32.mrb[13].mxu1 }
 0x1ed   : > { %v752_v22 = vadd.f32 %v1413_v50, %v751_v21  ;;  %v1119_v23 = vpop.f32.mrb[14].mxu1 }
 0x1ee   : > { %1184 = vtanh.f32 %v760_v20  ;;  %v763_v24 = vadd.f32 %v1119_v23, %v1413_v50  ;;  %v754_v25 = vpop.f32.mrb[15].mxu1 }
 0x1ef   : > { %1186 = vtanh.f32 %v752_v22  ;;  %v755_v26 = vadd.f32 %v1413_v50, %v754_v25 }
 0x1f0   : > { %v1177_v27 = vpop.eup %1176  ;;  %1188 = vtanh.f32 %v763_v24 }
 0x1f1   : > { %v1179_v28 = vpop.eup %1178  ;;  %873 = vst.msk [vmem:[%s1426_s14 + $0x50] sm:$0xff] %vm862_vm2, %v1177_v27  ;;  %1190 = vtanh.f32 %v755_v26 }
 0x1f2   : > { %v1181_v29 = vpop.eup %1180  ;;  %871 = vst.msk [vmem:[%s1426_s14 + $0x40] sm:$0xff] %vm862_vm2, %v1179_v28 }
 0x1f3   : > { %v1183_v30 = vpop.eup %1182  ;;  %874 = vst.msk [vmem:[%s1426_s14 + $0x58] sm:$0xff] %vm862_vm2, %v1181_v29  ;;  %v1122_v31 = vpop.f32.mrb[16].mxu1 }
 0x1f4   : > { %872 = vst.msk [vmem:[%s1426_s14 + $0x48] sm:$0xff] %vm862_vm2, %v1183_v30  ;;  %v776_v32 = vadd.f32 %v1122_v31, %v1413_v50  ;;  %v767_v33 = vpop.f32.mrb[17].mxu1 }
 0x1f5   : > { %v768_v34 = vadd.f32 %v1413_v50, %v767_v33  ;;  %v1123_v35 = vpop.f32.mrb[18].mxu1 }
 0x1f6   : > { %1192 = vtanh.f32 %v776_v32  ;;  %v779_v36 = vadd.f32 %v1123_v35, %v1413_v50  ;;  %v770_v37 = vpop.f32.mrb[19].mxu1 }
 0x1f7   : > { %1194 = vtanh.f32 %v768_v34  ;;  %v771_v38 = vadd.f32 %v1413_v50, %v770_v37 }
 0x1f8   : > { %v1185_v39 = vpop.eup %1184  ;;  %1196 = vtanh.f32 %v779_v36 }
 0x1f9   : > { %v1187_v40 = vpop.eup %1186  ;;  %877 = vst.msk [vmem:[%s1426_s14 + $0x70] sm:$0xff] %vm862_vm2, %v1185_v39  ;;  %1198 = vtanh.f32 %v771_v38 }
 0x1fa   : > { %v1189_v41 = vpop.eup %1188  ;;  %875 = vst.msk [vmem:[%s1426_s14 + $0x60] sm:$0xff] %vm862_vm2, %v1187_v40 }
 0x1fb   : > { %v1191_v42 = vpop.eup %1190  ;;  %878 = vst.msk [vmem:[%s1426_s14 + $0x78] sm:$0xff] %vm862_vm2, %v1189_v41  ;;  %v1126_v43 = vpop.f32.mrb[20].mxu1 }
 0x1fc   : > { %876 = vst.msk [vmem:[%s1426_s14 + $0x68] sm:$0xff] %vm862_vm2, %v1191_v42  ;;  %v792_v44 = vadd.f32 %v1126_v43, %v1413_v50  ;;  %v783_v45 = vpop.f32.mrb[21].mxu1 }
 0x1fd   : > { %v784_v46 = vadd.f32 %v1413_v50, %v783_v45  ;;  %v1127_v47 = vpop.f32.mrb[22].mxu1 }
 0x1fe   : > { %1200 = vtanh.f32 %v792_v44  ;;  %v795_v48 = vadd.f32 %v1127_v47, %v1413_v50  ;;  %v786_v49 = vpop.f32.mrb[23].mxu1 }
 0x1ff   : > { %1202 = vtanh.f32 %v784_v46  ;;  %v787_v51 = vadd.f32 %v1413_v50, %v786_v49 }
 0x200   : > { %v1193_v52 = vpop.eup %1192  ;;  %1204 = vtanh.f32 %v795_v48 }
 0x201   : > { %v1195_v53 = vpop.eup %1194  ;;  %881 = vst.msk [vmem:[%s1426_s14 + $0x90] sm:$0xff] %vm862_vm2, %v1193_v52  ;;  %1206 = vtanh.f32 %v787_v51 }
 0x202   : > { %v1197_v0 = vpop.eup %1196  ;;  %879 = vst.msk [vmem:[%s1426_s14 + $0x80] sm:$0xff] %vm862_vm2, %v1195_v53 }
 0x203   : > { %v1199_v54 = vpop.eup %1198  ;;  %882 = vst.msk [vmem:[%s1426_s14 + $0x98] sm:$0xff] %vm862_vm2, %v1197_v0  ;;  %v1130_v55 = vpop.f32.mrb[24].mxu1 }
 0x204   : > { %880 = vst.msk [vmem:[%s1426_s14 + $0x88] sm:$0xff] %vm862_vm2, %v1199_v54  ;;  %v808_v56 = vadd.f32 %v1130_v55, %v1413_v50  ;;  %v799_v57 = vpop.f32.mrb[25].mxu1 }
 0x205   : > { %v800_v58 = vadd.f32 %v1413_v50, %v799_v57  ;;  %v1131_v59 = vpop.f32.mrb[26].mxu1 }
 0x206   : > { %1208 = vtanh.f32 %v808_v56  ;;  %v811_v60 = vadd.f32 %v1131_v59, %v1413_v50  ;;  %v802_v61 = vpop.f32.mrb[27].mxu1 }
 0x207   : > { %1210 = vtanh.f32 %v800_v58  ;;  %v803_v62 = vadd.f32 %v1413_v50, %v802_v61 }
 0x208   : > { %v1201_v63 = vpop.eup %1200  ;;  %1212 = vtanh.f32 %v811_v60 }
 0x209   : > { %v1203_v1 = vpop.eup %1202  ;;  %885 = vst.msk [vmem:[%s1426_s14 + $0xb0] sm:$0xff] %vm862_vm2, %v1201_v63  ;;  %1214 = vtanh.f32 %v803_v62 }
 0x20a   : > { %v1205_v2 = vpop.eup %1204  ;;  %883 = vst.msk [vmem:[%s1426_s14 + $0xa0] sm:$0xff] %vm862_vm2, %v1203_v1 }
 0x20b   : > { %v1207_v3 = vpop.eup %1206  ;;  %886 = vst.msk [vmem:[%s1426_s14 + $0xb8] sm:$0xff] %vm862_vm2, %v1205_v2  ;;  %v1134_v4 = vpop.f32.mrb[28].mxu1 }
 0x20c   : > { %884 = vst.msk [vmem:[%s1426_s14 + $0xa8] sm:$0xff] %vm862_vm2, %v1207_v3  ;;  %v824_v5 = vadd.f32 %v1134_v4, %v1413_v50  ;;  %v815_v6 = vpop.f32.mrb[29].mxu1 }
 0x20d   : > { %v816_v7 = vadd.f32 %v1413_v50, %v815_v6  ;;  %v1135_v8 = vpop.f32.mrb[30].mxu1 }
 0x20e   : > { %1216 = vtanh.f32 %v824_v5  ;;  %v827_v9 = vadd.f32 %v1135_v8, %v1413_v50  ;;  %v818_v10 = vpop.f32.mrb[31].mxu1 }
 0x20f   : > { %1218 = vtanh.f32 %v816_v7  ;;  %v819_v11 = vadd.f32 %v1413_v50, %v818_v10 }
 0x210   : > { %v1209_v12 = vpop.eup %1208  ;;  %1220 = vtanh.f32 %v827_v9 }
 0x211   : > { %v1211_v13 = vpop.eup %1210  ;;  %889 = vst.msk [vmem:[%s1426_s14 + $0xd0] sm:$0xff] %vm862_vm2, %v1209_v12  ;;  %1222 = vtanh.f32 %v819_v11 }
 0x212   : > { %v1213_v14 = vpop.eup %1212  ;;  %887 = vst.msk [vmem:[%s1426_s14 + $0xc0] sm:$0xff] %vm862_vm2, %v1211_v13 }
 0x213   : > { %v1215_v15 = vpop.eup %1214  ;;  %890 = vst.msk [vmem:[%s1426_s14 + $0xd8] sm:$0xff] %vm862_vm2, %v1213_v14 }
 0x214   : > { %888 = vst.msk [vmem:[%s1426_s14 + $0xc8] sm:$0xff] %vm862_vm2, %v1215_v15 }
 0x218   : > { %v1217_v16 = vpop.eup %1216 }
 0x219   : > { %v1219_v17 = vpop.eup %1218  ;;  %893 = vst.msk [vmem:[%s1426_s14 + $0xf0] sm:$0xff] %vm862_vm2, %v1217_v16 }
 0x21a   : > { %v1221_v50 = vpop.eup %1220  ;;  %891 = vst.msk [vmem:[%s1426_s14 + $0xe0] sm:$0xff] %vm862_vm2, %v1219_v17 }
 0x21b   : > { %v1223_v18 = vpop.eup %1222  ;;  %894 = vst.msk [vmem:[%s1426_s14 + $0xf8] sm:$0xff] %vm862_vm2, %v1221_v50 }
 0x21c   : > { %892 = vst.msk [vmem:[%s1426_s14 + $0xe8] sm:$0xff] %vm862_vm2, %v1223_v18 }
 0x21d PF: > { %s15_s18 = sadd.s32 1, %s1230_s18  }
 0x21e   : > { %p12_p4 = scmp.ge.s32.totalorder %s15_s18, 4  }
 0x220   :  { %14 = sbr.rel (!%p12_p4) target bundleno = 1 (0x1), region = 70 }

</bundles_post_ra>
